<compile_context>
chip_gen: v7x
topology: tpu7x:2x2x1
jax: 0.10.0
libtpu: 0.0.40
codegen_flags: <defaults>
</compile_context>

<pallas_src>
import jax
import jax.numpy as jnp
from jax.experimental import pallas as pl
from jax.experimental.pallas import tpu as pltpu


LANE = 128  # TPU vreg lane width -- narrow output dims are padded to this.


def _round_up(x: int, m: int) -> int:
    return (x + m - 1) // m * m


# ----------------------------- Pallas kernels -----------------------------

def conv1x1_relu_kernel(x_ref, w_ref, b_ref, o_ref):
    """Pointwise Conv1d + ReLU, lane-dense over the merged (batch*length) axis.

    x_ref: (C_in, TILE) bf16, w_ref: (C_out, C_in) bf16, b_ref: (C_out, 1) f32,
    o_ref: (C_out, TILE) bf16.  Single MXU dot per grid step; bias/ReLU in f32.
    """
    y = jnp.dot(w_ref[...], x_ref[...], preferred_element_type=jnp.float32)
    o_ref[...] = jnp.maximum(y + b_ref[...], 0.0).astype(o_ref.dtype)


def mlp_kernel(x_ref, w1_ref, b1_ref, w2_ref, b2_ref, w3_ref, b3_ref, o_ref):
    """fc_1+ReLU -> fc_2+ReLU -> fc_3 on one row tile (dropout == identity).

    x_ref: (TILE_N, out_size) bf16; w*: bf16 (in, out), pre-transposed/padded;
    b*: f32 (1, out); o_ref: (TILE_N, LANE) f32 (lane-dense, padded classes).
    """
    h1 = jnp.dot(x_ref[...], w1_ref[...], preferred_element_type=jnp.float32)
    h1 = jnp.maximum(h1 + b1_ref[...], 0.0)
    h2 = jnp.dot(h1.astype(jnp.bfloat16), w2_ref[...],
                 preferred_element_type=jnp.float32)
    h2 = jnp.maximum(h2 + b2_ref[...], 0.0)
    o = jnp.dot(h2.astype(jnp.bfloat16), w3_ref[...],
                preferred_element_type=jnp.float32)
    o_ref[...] = o + b3_ref[...]


# ------------------------------- Wrappers ----------------------------------

def conv1x1_relu_rows(x, w_bf16, b_f32, *, tile_cols=2048):
    """x: (B, C_in, L) f32 -> rows (B*L, C_out) bf16 in PyTorch view(-1,C_out) order."""
    B, C_in, L = x.shape
    C_out = w_bf16.shape[0]
    BL = B * L
    # Merge batch & length onto the 128-lane axis (wrapper-side layout plumbing).
    xt = jnp.transpose(x, (1, 0, 2)).reshape(C_in, BL).astype(jnp.bfloat16)
    tile = min(_round_up(tile_cols, LANE), _round_up(BL, LANE))
    BL_pad = _round_up(BL, tile)
    if BL_pad != BL:
        xt = jnp.pad(xt, ((0, 0), (0, BL_pad - BL)))
    y = pl.pallas_call(
        conv1x1_relu_kernel,
        out_shape=jax.ShapeDtypeStruct((C_out, BL_pad), jnp.bfloat16),
        grid_spec=pltpu.PrefetchScalarGridSpec(
            num_scalar_prefetch=0,
            grid=(BL_pad // tile,),
            in_specs=[
                pl.BlockSpec((C_in, tile), lambda i: (0, i)),
                pl.BlockSpec((C_out, C_in), lambda i: (0, 0)),
                pl.BlockSpec((C_out, 1), lambda i: (0, 0)),
            ],
            out_specs=pl.BlockSpec((C_out, tile), lambda i: (0, i)),
        ),
        compiler_params=pltpu.CompilerParams(
            dimension_semantics=("parallel",)),
    )(xt, w_bf16, b_f32.reshape(C_out, 1))
    # Back to contiguous NCW order, then PyTorch's x.view(-1, out_size).
    # TODO(synk): fuse conv + fc_1 into one pallas_call; view(-1, out_size)
    # interleaves the channel/length axes, which would need an in-kernel
    # relayout, so the handoff stays as cheap wrapper-side XLA transpose/reshape.
    y = y[:, :BL].reshape(C_out, B, L)
    return jnp.transpose(y, (1, 0, 2)).reshape(B * L, C_out)


def mlp(rows, prep, *, tile_n=1024):
    """rows: (N, out_size) bf16 -> (N_pad, LANE) f32 (caller slices rows/classes)."""
    N, F = rows.shape
    Cp = prep["w3"].shape[1]                  # lane-padded class width (128)
    n8 = _round_up(N, 8)
    tile = min(tile_n, n8)                    # multiple of 8 sublanes
    # v7x has 2 TensorCores: avoid a single-step "parallel" grid when splittable.
    if tile == n8 and tile >= 16:
        tile = _round_up(pl.cdiv(n8, 2), 8)
    N_pad = _round_up(N, tile)
    if N_pad != N:
        rows = jnp.pad(rows, ((0, N_pad - N), (0, 0)))
    const = lambda i: (0, 0)                  # grid-invariant weights / biases
    return pl.pallas_call(
        mlp_kernel,
        out_shape=jax.ShapeDtypeStruct((N_pad, Cp), jnp.float32),
        grid_spec=pltpu.PrefetchScalarGridSpec(
            num_scalar_prefetch=0,
            grid=(N_pad // tile,),
            in_specs=[
                pl.BlockSpec((tile, F), lambda i: (i, 0)),
                # Constant index_map => weights/biases are DMA'd only once.
                # (Single-buffering via pipeline_mode=pl.Buffered(1) would save
                #  ~0.6 MiB VMEM; left out in favor of lowering robustness.)
                pl.BlockSpec(prep["w1"].shape, const),
                pl.BlockSpec(prep["b1"].shape, const),
                pl.BlockSpec(prep["w2"].shape, const),
                pl.BlockSpec(prep["b2"].shape, const),
                pl.BlockSpec(prep["w3"].shape, const),
                pl.BlockSpec(prep["b3"].shape, const),
            ],
            out_specs=pl.BlockSpec((tile, Cp), lambda i: (i, 0)),
        ),
        compiler_params=pltpu.CompilerParams(
            dimension_semantics=("parallel",),
            # tile=1024: h1 f32 (8 MiB) + bf16 copy + double-buffered IO fits
            # in ~16 MiB; raise past the 16/32 MiB scoped defaults, still well
            # under v7x's 64 MiB physical VMEM.
            vmem_limit_bytes=64 * 1024 * 1024),
    )(rows, prep["w1"], prep["b1"], prep["w2"], prep["b2"],
      prep["w3"], prep["b3"])


def prepare_params(p):
    """One-time weight prep outside the hot path: transpose to (in, out),
    zero-pad narrow output dims to LANE lanes, cast matmul operands to bf16."""
    h1_out = p["fc1_w"].shape[0]          # 2048
    h2_out = p["fc2_w"].shape[0]          # 32
    n_cls = p["fc3_w"].shape[0]           # num_classes
    h2_pad = _round_up(h2_out, LANE)      # 128
    cls_pad = _round_up(n_cls, LANE)      # 128

    w2 = jnp.zeros((h1_out, h2_pad), jnp.float32).at[:, :h2_out].set(p["fc2_w"].T)
    b2 = jnp.zeros((1, h2_pad), jnp.float32).at[0, :h2_out].set(p["fc2_b"])
    w3 = jnp.zeros((h2_pad, cls_pad), jnp.float32).at[:h2_out, :n_cls].set(p["fc3_w"].T)
    b3 = jnp.zeros((1, cls_pad), jnp.float32).at[0, :n_cls].set(p["fc3_b"])

    return {
        "c1_w": p["c1_w"].astype(jnp.bfloat16),               # bf16 MXU operand
        "c1_b": p["c1_b"].astype(jnp.float32),                # bias stays f32
        "w1": p["fc1_w"].T.astype(jnp.bfloat16),               # (out_size, 2048)
        "b1": p["fc1_b"].reshape(1, -1).astype(jnp.float32),
        "w2": w2.astype(jnp.bfloat16),
        "b2": b2,
        "w3": w3.astype(jnp.bfloat16),
        "b3": b3,
        "out_size": int(p["c1_w"].shape[0]),
        "num_classes": int(n_cls),
    }


def lstm_cnn_old_forward(x, prep, *, tile_n=1024, conv_tile_cols=2048):
    # Conv1d(k=1) + ReLU (Pallas, lane-dense, bf16); rows already in the
    # PyTorch x.view(-1, out_size) order.
    rows = conv1x1_relu_rows(x, prep["c1_w"], prep["c1_b"],
                             tile_cols=conv_tile_cols)
    out = mlp(rows, prep, tile_n=tile_n)
    # Drop row padding and the lane padding of the class dimension.
    return out[:rows.shape[0], :prep["num_classes"]]


# ------------------------- deterministic param init -------------------------

def init_params(key, input_size, out_size, num_classes):
    ks = jax.random.split(key, 8)

    def uniform(k, shape, fan_in):
        bound = 1.0 / jnp.sqrt(jnp.float32(fan_in))
        return jax.random.uniform(k, shape, jnp.float32, -bound, bound)

    return {
        # Conv1d(in=input_size, out=out_size, k=1): weight (out, in, 1) -> squeeze
        "c1_w": uniform(ks[0], (out_size, input_size), input_size),
        "c1_b": uniform(ks[1], (out_size,), input_size),
        # fc_1: Linear(out_size -> 2048)   (num_layers=1, not bidirectional)
        "fc1_w": uniform(ks[2], (2048, out_size), out_size),
        "fc1_b": uniform(ks[3], (2048,), out_size),
        # fc_2: Linear(2048 -> 32)
        "fc2_w": uniform(ks[4], (32, 2048), 2048),
        "fc2_b": uniform(ks[5], (32,), 2048),
        # fc_3: Linear(32 -> num_classes)
        "fc3_w": uniform(ks[6], (num_classes, 32), 32),
        "fc3_b": uniform(ks[7], (num_classes,), 32),
    }


def reference_forward(x, p):
    """Pure-JAX (f32) reference of the same forward pass."""
    y = jnp.einsum("oc,bcl->bol", p["c1_w"], x) + p["c1_b"][None, :, None]
    y = jnp.maximum(y, 0.0)
    out = jnp.reshape(y, (-1, p["c1_w"].shape[0]))
    h = jnp.maximum(out @ p["fc1_w"].T + p["fc1_b"], 0.0)
    h = jnp.maximum(h @ p["fc2_w"].T + p["fc2_b"], 0.0)
    return h @ p["fc3_w"].T + p["fc3_b"]


# --------------------------------- main -------------------------------------

if __name__ == "__main__":
    # Small shapes consistent with the module: num_layers=1, bidirectional=False,
    # so fc_1 in_features == out_size.
    B, C_in, L = 2, 4, 16          # input x: (batch, input_size, seq_len) NCW
    out_size = 8
    num_classes = 4

    key = jax.random.PRNGKey(0)
    k_x, k_p = jax.random.split(key)
    x = jax.random.normal(k_x, (B, C_in, L), jnp.float32)
    params = init_params(k_p, C_in, out_size, num_classes)
    prepared = prepare_params(params)          # one-time weight prep

    out = lstm_cnn_old_forward(x, prepared)
    out = jax.block_until_ready(out)

    ref = reference_forward(x, params)
    assert out.shape == (B * L, num_classes), out.shape
    # bf16 MXU operands with f32 accumulation vs. pure-f32 reference.
    assert jnp.allclose(out, ref, atol=2e-2, rtol=2e-2), "mismatch vs reference"

    print("KERNEL_OK")
</pallas_src>

<mosaic_0001>
module attributes {stable_mosaic.version = 11 : i64} {
  func.func @conv1x1_relu_kernel(%arg0: i32, %arg1: memref<4x128xbf16, #tpu.memory_space<vmem>>, %arg2: memref<8x4xbf16, #tpu.memory_space<vmem>>, %arg3: memref<8x1xf32, #tpu.memory_space<vmem>>, %arg4: memref<8x128xbf16, #tpu.memory_space<vmem>>) attributes {dimension_semantics = [#tpu.dimension_semantics<parallel>], iteration_bounds = array<i64: 1>, scalar_prefetch = 0 : i64, scratch_operands = 0 : i64, tpu.core_type = #tpu.core_type<tc>, window_params = [{transform_indices = @transform_0, window_bounds = array<i64: 4, 128>}, {pipeline_mode = #tpu.pipeline_mode<synchronous>, transform_indices = @transform_1, window_bounds = array<i64: 8, 4>}, {pipeline_mode = #tpu.pipeline_mode<synchronous>, transform_indices = @transform_2, window_bounds = array<i64: 8, 1>}, {transform_indices = @transform_3, window_bounds = array<i64: 8, 128>}]} {
    %c0 = arith.constant 0 : index
    %c0_0 = arith.constant 0 : index
    %0 = vector.load %arg2[%c0, %c0_0] : memref<8x4xbf16, #tpu.memory_space<vmem>>, vector<8x4xbf16>
    %c0_1 = arith.constant 0 : index
    %c0_2 = arith.constant 0 : index
    %1 = vector.load %arg1[%c0_1, %c0_2] : memref<4x128xbf16, #tpu.memory_space<vmem>>, vector<4x128xbf16>
    %cst = arith.constant dense<0.000000e+00> : vector<8x128xf32>
    %2 = tpu.matmul %0, %1, %cst {dimension_numbers = #tpu.dot_dimension_numbers<[1], [0], [0], [1], [0, 0, 1, 1], [], []>} : vector<8x4xbf16>, vector<4x128xbf16>, vector<8x128xf32> -> vector<8x128xf32>
    %c0_3 = arith.constant 0 : index
    %c0_4 = arith.constant 0 : index
    %3 = vector.load %arg3[%c0_3, %c0_4] : memref<8x1xf32, #tpu.memory_space<vmem>>, vector<8x1xf32>
    %4 = vector.broadcast %3 : vector<8x1xf32> to vector<8x128xf32>
    %5 = arith.addf %2, %4 : vector<8x128xf32>
    %cst_5 = arith.constant 0.000000e+00 : f32
    %6 = vector.broadcast %cst_5 : f32 to vector<8x128xf32>
    %7 = arith.maximumf %5, %6 : vector<8x128xf32>
    %8 = arith.truncf %7 : vector<8x128xf32> to vector<8x128xbf16>
    %c0_6 = arith.constant 0 : index
    %c0_7 = arith.constant 0 : index
    %9 = vector.load %arg4[%c0_6, %c0_7] : memref<8x128xbf16, #tpu.memory_space<vmem>>, vector<8x128xbf16>
    tpu.vector_store %arg4[%c0_6, %c0_7], %8 {strides = array<i32>} : memref<8x128xbf16, #tpu.memory_space<vmem>>, vector<8x128xbf16>,
    return
  }
  func.func @transform_0(%arg0: i32) -> (i32, i32) {
    %c0_i32 = arith.constant 0 : i32
    %c0_i32_0 = arith.constant 0 : i32
    return %c0_i32, %arg0 : i32, i32
  }
  func.func @transform_1(%arg0: i32) -> (i32, i32) {
    %c0_i32 = arith.constant 0 : i32
    %c0_i32_0 = arith.constant 0 : i32
    %c0_i32_1 = arith.constant 0 : i32
    return %c0_i32, %c0_i32_0 : i32, i32
  }
  func.func @transform_2(%arg0: i32) -> (i32, i32) {
    %c0_i32 = arith.constant 0 : i32
    %c0_i32_0 = arith.constant 0 : i32
    %c0_i32_1 = arith.constant 0 : i32
    return %c0_i32, %c0_i32_0 : i32, i32
  }
  func.func @transform_3(%arg0: i32) -> (i32, i32) {
    %c0_i32 = arith.constant 0 : i32
    %c0_i32_0 = arith.constant 0 : i32
    return %c0_i32, %arg0 : i32, i32
  }
}

</mosaic_0001>

<bundles_post_ra>
// kernel: tpu_custom_call.1
= control target key start
LH: loop header
LB: loop body
LE: loop exit
PB: predicated region body
PF: predicated region fallthrough
CT: control target
= control target key end

     0   :  { %vm28_vm0 = vcmask 1041408   ;;  %v127_v1 = vmov 0.0   ;;  %vm128_vm1 = vmmov 0   ;;  %vm24_vm2 = vcmask 31744   ;;  %s172_s0 = inlined_call_operand.vmem [shape: bf16[4,128], index: 0, kind: input, shape index: {}]   ;;  %s173_s1 = inlined_call_operand.vmem [shape: bf16[8,4], index: 1, kind: input, shape index: {}]   ;;  %s174_s2 = inlined_call_operand.vmem [shape: f32[8,1], index: 2, kind: input, shape index: {}]   ;;  %s175_s3 = inlined_call_operand.hbm [shape: bf16[8,128], index: 3, kind: output, shape index: {}]  }
   0x1   :  { %v17_v0 = vld [vmem:[%s172_s0] sm:$0x3]  ;;  %92 = vmatprep.subr.bf16.mxu0 %v127_v1  ;;  %94 = vmatprep.mubr.msk.bf16.mxu0 %vm128_vm1, %v127_v1  ;;  %v129_v5 = vmov 0  }
   0x2   :  { %v30_v2 = vsel %vm28_vm0, %v17_v0, 0  ;;  %v18_v3 = vld [vmem:[%s174_s2] sm:$0xff]  ;;  %102 = vset.pattern.permute.xlu0 %v129_v5 }
   0x3   :  { %93 = vmatpush3.bf16.msra.mxu0 %v30_v2  ;;  %v16_v4 = vld [vmem:[%s173_s1] sm:$0xf] }
   0x4   :  { %8 = vsyncpa [#allocation3], 0  ;;  %21 = vperm.xlu0 %102, %v18_v3   ;;  %s130_s0 = smov [#allocation2]  }
   0x5   :  { %s81_s18 = sshll.u32 %s130_s0, 4  ;;  %s82_s18 = int_to_ptr.vmem [resolvable:$true] %s81_s18 }
   0x6   :  { %95 = vmatmul.mubr.msk.bf16.vlgmr.msra.gmra.mrb[0].mxu0 %vm24_vm2, %v16_v4  ;;  %s103_s2 = scalar_lea.vmem %s82_s18, 64  ;;  %p108_p1 = scmp.lt.s32.totalorder %s82_s18, %s82_s18 }
   0x7   :  { %p104_p0 = scmp.ne.s32.totalorder %s82_s18, %s103_s2  ;;  %p109_p2 = scmp.lt.s32.totalorder %s103_s2, %s103_s2 }
   0x9   :  { %p110_p3 = por %p109_p2, %p108_p1 }
   0xb   :  { %p111_p4 = pnand %p110_p3, %p104_p0 }
  0x83   :  { %v22_v6 = vpop.permute.xlu0 %21 }
  0xd9   :  { %v66_v7 = vpop.f32.mrb[0].mxu0 }
  0xda   :  { %v67_v8 = vadd.f32 %v66_v7, %v22_v6  ;;  %v96_v9 = vpop.f32.mrb[1].mxu0 }
  0xdb   :  { %v69_v10 = vpop.f32.mrb[2].mxu0 }
  0xdc   :  { %v72_v11 = vmax.f32 %v67_v8, 0.0  ;;  %v97_v12 = vpop.f32.mrb[3].mxu0 }
  0xde   :  { %v73_v13 = vpack.c.bf16 %v72_v11, %v72_v11 }
  0xe0   :  { %74 = vst [vmem:[#allocation2] sm:$0xf] %v73_v13 }
  0xe1   :  { %114 = shalt.err (!%p111_p4)
}
  0xe2   :  { %s115_s20 = scalar_lea.hbm %s175_s3, 64 }
  0xe3   :  { %p116_p5 = scmp.ne.s32.totalorder %s175_s3, %s115_s20  ;;  %p119_p6 = scmp.lt.u32.totalorder %s115_s20, %s175_s3 }
  0xe5   :  { %p121_p7 = pnand %p119_p6, %p116_p5 }
  0xe7   :  { %124 = shalt.err (!%p121_p7)
}
  0xe8   :  { %84 = dma.vmem_to_hbm [thread:$0]  %s82_s18, 64, %s175_s3, [#allocation3]  }
  0xe9   :  { %125 = dma.done.wait [#allocation3], 64  }
  0xea   :  { %126 = vsyncadd [#allocation3], 4294967232 }
  0xeb   :  { %88 = vsyncpa [#allocation3], 1 }

</bundles_post_ra>
